<compile_context>
chip_gen: v7x
topology: tpu7x:2x2x1
jax: 0.10.0
libtpu: 0.0.40
codegen_flags: <defaults>
</compile_context>

<pallas_src>
import math
from functools import partial

import jax
import jax.numpy as jnp
from jax.experimental import pallas as pl
from jax.experimental.pallas import tpu as pltpu


def _row_tile(m):
    # Split rows into >=2 "parallel" grid blocks whenever possible so the HBM<->VMEM pipeline
    # double-buffers and v7x megacore has something to shard; cap at 512 rows (v7x 64 MiB VMEM;
    # 1024 is marginally better on v5e/v6e for very large m).
    if m <= 8:
        return m
    half = -(-m // 2)
    return min(512, -(-half // 8) * 8)


# ----------------------------- Linear (matmul + bias) -----------------------------

def _linear_kernel(x_ref, w_ref, b_ref, o_ref):
    w = w_ref[...]
    acc = jnp.dot(x_ref[...].astype(w.dtype), w,
                  preferred_element_type=jnp.float32) + b_ref[...]
    o_ref[...] = acc.astype(o_ref.dtype)


def pallas_linear(x2d, w, b, out_dtype=jnp.float32):
    M, K = x2d.shape
    K2, Nout = w.shape
    assert K == K2
    tm = _row_tile(M)
    return pl.pallas_call(
        _linear_kernel,
        out_shape=jax.ShapeDtypeStruct((M, Nout), out_dtype),
        grid=(pl.cdiv(M, tm),),
        in_specs=[
            pl.BlockSpec((tm, K), lambda i: (i, 0)),
            pl.BlockSpec((K, Nout), lambda i: (0, 0)),
            pl.BlockSpec((1, Nout), lambda i: (0, 0)),
        ],
        out_specs=pl.BlockSpec((tm, Nout), lambda i: (i, 0)),
        compiler_params=pltpu.CompilerParams(dimension_semantics=("parallel",)),
    )(x2d, w, b.reshape(1, Nout))


# ------------- Fused sampling-location + attention-weight (softmax) projection -------------

def _offsets_attn_kernel(q_ref, r_ref, wq_ref, e_ref, bq_ref, loc_ref, attn_ref, *,
                         two_hlp, n_heads):
    wq = wq_ref[...]                                             # bf16 fused weight
    # one wide MXU matmul: [offsets (permuted + 1/normalizer-scaled) | attention logits]
    proj = jnp.dot(q_ref[...].astype(wq.dtype), wq,
                   preferred_element_type=jnp.float32) + bq_ref[...]
    # sampling locations: exact f32 reference-point expansion (0/1 matrix) + scaled offsets
    loc_ref[...] = proj[:, :two_hlp] + jnp.dot(
        r_ref[...], e_ref[...], preferred_element_type=jnp.float32)
    # exact per-head softmax over the L*P group (per-group max, exact divide)
    logits = proj[:, two_hlp:]
    hlp = attn_ref.shape[-1]
    lp = hlp // n_heads
    parts = []
    for h in range(n_heads):
        g = logits[:, h * lp:(h + 1) * lp]
        m = jnp.max(g, axis=-1, keepdims=True)
        e = jnp.exp(g - m)
        parts.append(e / jnp.sum(e, axis=-1, keepdims=True))
    attn_ref[...] = jnp.concatenate(parts, axis=-1)


def pallas_offsets_attn(q2d, ref2d, w_qcat, e_loc, b_qcat, n_heads, hlp):
    M, C = q2d.shape
    _, twoL = ref2d.shape
    three_hlp = w_qcat.shape[1]
    two_hlp = 2 * hlp
    tm = _row_tile(M)
    kern = partial(_offsets_attn_kernel, two_hlp=two_hlp, n_heads=n_heads)
    return pl.pallas_call(
        kern,
        out_shape=(
            jax.ShapeDtypeStruct((M, two_hlp), jnp.float32),
            jax.ShapeDtypeStruct((M, hlp), jnp.float32),
        ),
        grid=(pl.cdiv(M, tm),),
        in_specs=[
            pl.BlockSpec((tm, C), lambda i: (i, 0)),
            pl.BlockSpec((tm, twoL), lambda i: (i, 0)),
            pl.BlockSpec((C, three_hlp), lambda i: (0, 0)),
            pl.BlockSpec((twoL, two_hlp), lambda i: (0, 0)),
            pl.BlockSpec((1, three_hlp), lambda i: (0, 0)),
        ],
        out_specs=(
            pl.BlockSpec((tm, two_hlp), lambda i: (i, 0)),
            pl.BlockSpec((tm, hlp), lambda i: (i, 0)),
        ),
        compiler_params=pltpu.CompilerParams(dimension_semantics=("parallel",)),
    )(q2d, ref2d, w_qcat, e_loc, b_qcat)


# ---------------------- Deformable attention sampling core (+ fused output proj) ----------------

def _deform_kernel(loc_ref, attn_ref, val_ref, lvlf_ref, lvli_ref, wout_ref, bout_ref,
                   out_ref, *, n_heads, n_levels, n_points, mxu_dtype):
    lp = n_levels * n_points
    hlp = n_heads * lp
    S = val_ref.shape[1]
    C = val_ref.shape[2]
    D = C // n_heads
    TLq = loc_ref.shape[1]

    loc = loc_ref[0]                       # (TLq, 2*HLP): x columns then y columns, (h,l,p) minor
    attn = attn_ref[0]                     # (TLq, HLP) softmaxed attention weights
    val = val_ref[0]                       # (S, C) value (bf16), heads along channels
    wout = wout_ref[...]                   # (C, C) output projection (bf16)
    bout = bout_ref[...]                   # (1, C) output bias (f32)

    wc = lvlf_ref[0:1, :]                  # (1, HLP) level width  per column (f32)
    hc = lvlf_ref[1:2, :]                  # (1, HLP) level height per column (f32)
    wci = lvli_ref[0:1, :]                 # int32 width / height / flat level start per column
    hci = lvli_ref[1:2, :]
    sti = lvli_ref[2:3, :]

    # ---- lane-dense bilinear coordinate math over the full (TLq, HLP) width (f32, VPU) ----
    # torch.grid_sample(align_corners=False, padding_mode='zeros') with grid = 2*loc - 1:
    #   pixel coords  x = loc_x*W - 0.5 ,  y = loc_y*H - 0.5
    x = loc[:, :hlp] * wc - 0.5
    y = loc[:, hlp:] * hc - 0.5
    x0f = jnp.floor(x)
    y0f = jnp.floor(y)
    fx = x - x0f
    fy = y - y0f
    x0 = x0f.astype(jnp.int32)
    y0 = y0f.astype(jnp.int32)

    corners = []
    for dx, dy in ((0, 0), (1, 0), (0, 1), (1, 1)):
        xi = x0 + dx
        yi = y0 + dy
        wgt = (fx if dx else 1.0 - fx) * (fy if dy else 1.0 - fy)
        valid = (xi >= 0) & (xi < wci) & (yi >= 0) & (yi < hci)
        coeff = jnp.where(valid, wgt * attn, 0.0)        # bilinear weight * attention weight
        idx = sti + yi * wci + xi                        # flat value row; only used in '==' below,
        corners.append((idx, coeff))                     # OOB aliasing is harmless (coeff == 0)

    iota_s = jax.lax.broadcasted_iota(jnp.int32, (TLq, S), 1)

    # ---- per-head sparse sampling matrix + fused output projection ----
    # out = sum_h A_h @ (V_h @ Wout_h) + b_out  ==  output_proj(concat_h A_h @ V_h)
    # TODO(synk): replace the dense (TLq, S) one-hot A_h with a vectorized corner-row gather
    #             (DMA gather driven by SMEM indices) for DETR-scale S; kept for small S.
    acc = jnp.zeros((TLq, C), jnp.float32)
    for h in range(n_heads):
        A = jnp.zeros((TLq, S), jnp.float32)
        for k in range(lp):
            col = h * lp + k
            for idx, coeff in corners:
                A = A + jnp.where(iota_s == idx[:, col:col + 1],
                                  coeff[:, col:col + 1], 0.0)
        u = jnp.dot(val[:, h * D:(h + 1) * D].astype(mxu_dtype),
                    wout[h * D:(h + 1) * D, :].astype(mxu_dtype),
                    preferred_element_type=jnp.float32)          # (S, C): wide MXU N-dim
        acc = acc + jnp.dot(A.astype(mxu_dtype), u.astype(mxu_dtype),
                            preferred_element_type=jnp.float32)  # (TLq, C)
    out_ref[0] = acc + bout


def ms_deform_attn_core(loc, attn, value, lvl_f, lvl_i, w_out, b_out,
                        n_heads, n_levels, n_points, mxu_dtype):
    N, Lq, two_hlp = loc.shape
    hlp = attn.shape[2]
    _, S, C = value.shape
    tlq = Lq if Lq <= 512 else 512        # Lq tiled as a second parallel grid axis at scale
    kern = partial(_deform_kernel, n_heads=n_heads, n_levels=n_levels,
                   n_points=n_points, mxu_dtype=mxu_dtype)
    return pl.pallas_call(
        kern,
        out_shape=jax.ShapeDtypeStruct((N, Lq, C), jnp.float32),
        grid=(N, pl.cdiv(Lq, tlq)),
        in_specs=[
            pl.BlockSpec((1, tlq, two_hlp), lambda n, t: (n, t, 0)),
            pl.BlockSpec((1, tlq, hlp), lambda n, t: (n, t, 0)),
            pl.BlockSpec((1, S, C), lambda n, t: (n, 0, 0)),   # value resident across Lq tiles
            pl.BlockSpec((2, hlp), lambda n, t: (0, 0)),
            pl.BlockSpec((3, hlp), lambda n, t: (0, 0)),
            pl.BlockSpec((C, C), lambda n, t: (0, 0)),
            pl.BlockSpec((1, C), lambda n, t: (0, 0)),
        ],
        out_specs=pl.BlockSpec((1, tlq, C), lambda n, t: (n, t, 0)),
        compiler_params=pltpu.CompilerParams(
            dimension_semantics=("parallel", "parallel"),
            vmem_limit_bytes=32 * 1024 * 1024),   # re-tune per generation at DETR scale
    )(loc, attn, value, lvl_f, lvl_i, w_out, b_out)


# ------------------------------ Module wrapper --------------------------------------

class QuantMSDAttentionPallas:
    def __init__(self, d_model=32, n_levels=2, n_heads=4, n_points=2,
                 spatial_shapes=((8, 8), (4, 4)), seed=0, mxu_dtype=jnp.bfloat16):
        assert d_model % n_heads == 0
        self.d_model = d_model
        self.n_levels = n_levels
        self.n_heads = n_heads
        self.n_points = n_points
        self.mxu_dtype = mxu_dtype          # bf16 MXU feed (f32 accumulate) on all generations
        self.spatial_shapes = [tuple(int(v) for v in hw) for hw in spatial_shapes]

        starts, s = [], 0
        for (h, w) in self.spatial_shapes:
            starts.append(s)
            s += h * w
        self.len_in = s

        H, L, P = n_heads, n_levels, n_points
        HLP = H * L * P
        self.hlp = HLP

        key = jax.random.PRNGKey(seed)
        k1, k2 = jax.random.split(key)
        bound = math.sqrt(6.0 / (d_model + d_model))  # xavier_uniform_

        # weights stored as (in_features, out_features) == torch weight.T ; MXU-facing ones bf16
        self.w_value = jax.random.uniform(k1, (d_model, d_model), jnp.float32,
                                          -bound, bound).astype(mxu_dtype)
        self.b_value = jnp.zeros((d_model,), jnp.float32)
        self.w_out = jax.random.uniform(k2, (d_model, d_model), jnp.float32,
                                        -bound, bound).astype(mxu_dtype)
        self.b_out = jnp.zeros((1, d_model), jnp.float32)

        # sampling_offsets: zero weight, structured bias (torch _reset_parameters)
        w_off = jnp.zeros((d_model, HLP * 2), jnp.float32)
        thetas = jnp.arange(H, dtype=jnp.float32) * (2.0 * math.pi / H)
        grid_init = jnp.stack([jnp.cos(thetas), jnp.sin(thetas)], -1)       # (H, 2)
        grid_init = grid_init / jnp.max(jnp.abs(grid_init), axis=-1, keepdims=True)
        grid_init = jnp.tile(grid_init.reshape(H, 1, 1, 2), (1, L, P, 1))
        grid_init = grid_init * (jnp.arange(P, dtype=jnp.float32) + 1.0).reshape(1, 1, P, 1)
        b_off = grid_init.reshape(-1)

        # attention_weights: zeros (torch _reset_parameters)
        w_attn = jnp.zeros((d_model, HLP), jnp.float32)
        b_attn = jnp.zeros((HLP,), jnp.float32)

        # ---- one-time host preprocessing folded into constants ----
        # permute offset columns to [all-x | all-y] ((h,l,p) minor) and fold 1/offset_normalizer
        perm, scale = [], []
        for k in range(2 * HLP):
            xy = 0 if k < HLP else 1
            base = k if k < HLP else k - HLP          # = h*L*P + l*P + p
            lvl = (base // P) % L
            perm.append(base * 2 + xy)                # original torch column index
            hgt, wid = self.spatial_shapes[lvl]
            scale.append(1.0 / float(wid if xy == 0 else hgt))   # x -> 1/W, y -> 1/H
        perm = jnp.asarray(perm, jnp.int32)
        scale = jnp.asarray(scale, jnp.float32)
        w_loc = w_off[:, perm] * scale[None, :]
        b_loc = b_off[perm] * scale

        # fused query projection [sampling-locations | attention-logits], bf16 MXU feed
        self.w_qcat = jnp.concatenate([w_loc, w_attn], axis=1).astype(mxu_dtype)
        self.b_qcat = jnp.concatenate([b_loc, b_attn], axis=0).reshape(1, 3 * HLP)

        # reference-point expansion matrix: ref_flat (.., L*2, xy minor) -> 2*HLP loc columns
        e_rows = []
        for j in range(2 * L):
            lj, xyj = j // 2, j % 2
            row = []
            for k in range(2 * HLP):
                xy = 0 if k < HLP else 1
                base = k if k < HLP else k - HLP
                lvl = (base // P) % L
                row.append(1.0 if (lvl == lj and xy == xyj) else 0.0)
            e_rows.append(row)
        self.e_loc = jnp.asarray(e_rows, jnp.float32)    # kept f32: exact reference points

        # per-column level geometry tables for the deform core (column order = (h,l,p))
        wcol, hcol, stcol = [], [], []
        for k in range(HLP):
            lvl = (k // P) % L
            hgt, wid = self.spatial_shapes[lvl]
            wcol.append(wid)
            hcol.append(hgt)
            stcol.append(starts[lvl])
        self.lvl_f = jnp.asarray([wcol, hcol], jnp.float32)          # (2, HLP)
        self.lvl_i = jnp.asarray([wcol, hcol, stcol], jnp.int32)     # (3, HLP)

    def __call__(self, query, reference_points, input_flatten, input_padding_mask=None):
        N, Lq, C = query.shape
        _, Len_in, _ = input_flatten.shape
        H, L, P = self.n_heads, self.n_levels, self.n_points
        HLP = self.hlp
        assert C == self.d_model
        assert Len_in == self.len_in
        assert reference_points.shape[-1] == 2
        # TODO(synk): input_padding_mask zeroing of value omitted (mask is None in this test).

        # value projection (row-tiled, bf16 MXU feed), value stored bf16 in (N, Len_in, C) layout
        value = pallas_linear(input_flatten.reshape(N * Len_in, C),
                              self.w_value, self.b_value,
                              out_dtype=self.mxu_dtype).reshape(N, Len_in, C)

        # fused sampling-location + softmaxed-attention projection
        q2 = query.reshape(N * Lq, C)
        ref2 = reference_points.reshape(N * Lq, L * 2)
        loc, attn = pallas_offsets_attn(q2, ref2, self.w_qcat, self.e_loc, self.b_qcat,
                                        n_heads=H, hlp=HLP)
        loc = loc.reshape(N, Lq, 2 * HLP)
        attn = attn.reshape(N, Lq, HLP)

        # deformable sampling core with the output projection fused -> (N, Lq, C)
        out = ms_deform_attn_core(loc, attn, value, self.lvl_f, self.lvl_i,
                                  self.w_out, self.b_out, H, L, P, self.mxu_dtype)
        return out


if __name__ == "__main__":
    d_model, n_levels, n_heads, n_points = 32, 2, 4, 2
    spatial_shapes = [(8, 8), (4, 4)]
    N, Lq = 2, 8
    Len_in = sum(h * w for h, w in spatial_shapes)

    key = jax.random.PRNGKey(0)
    kq, kr, kx = jax.random.split(key, 3)
    query = jax.random.normal(kq, (N, Lq, d_model), jnp.float32)
    reference_points = jax.random.uniform(kr, (N, Lq, n_levels, 2), jnp.float32)
    input_flatten = jax.random.normal(kx, (N, Len_in, d_model), jnp.float32)

    mod = QuantMSDAttentionPallas(d_model, n_levels, n_heads, n_points, spatial_shapes)
    out = mod(query, reference_points, input_flatten)
    jax.block_until_ready(out)
    assert out.shape == (N, Lq, d_model)
    assert bool(jnp.all(jnp.isfinite(out)))
    print("KERNEL_OK")
</pallas_src>

<mosaic_0001>
module attributes {stable_mosaic.version = 11 : i64} {
  func.func @_linear_kernel(%arg0: i32, %arg1: memref<80x32xf32, #tpu.memory_space<vmem>>, %arg2: memref<32x32xbf16, #tpu.memory_space<vmem>>, %arg3: memref<1x32xf32, #tpu.memory_space<vmem>>, %arg4: memref<80x32xbf16, #tpu.memory_space<vmem>>) attributes {dimension_semantics = [#tpu.dimension_semantics<parallel>], iteration_bounds = array<i64: 2>, scalar_prefetch = 0 : i64, scratch_operands = 0 : i64, tpu.core_type = #tpu.core_type<tc>, window_params = [{transform_indices = @transform_0, window_bounds = array<i64: 80, 32>}, {pipeline_mode = #tpu.pipeline_mode<synchronous>, transform_indices = @transform_1, window_bounds = array<i64: 32, 32>}, {pipeline_mode = #tpu.pipeline_mode<synchronous>, transform_indices = @transform_2, window_bounds = array<i64: 1, 32>}, {transform_indices = @transform_3, window_bounds = array<i64: 80, 32>}]} {
    %c0 = arith.constant 0 : index
    %c0_0 = arith.constant 0 : index
    %0 = vector.load %arg2[%c0, %c0_0] : memref<32x32xbf16, #tpu.memory_space<vmem>>, vector<32x32xbf16>
    %c0_1 = arith.constant 0 : index
    %c0_2 = arith.constant 0 : index
    %1 = vector.load %arg1[%c0_1, %c0_2] : memref<80x32xf32, #tpu.memory_space<vmem>>, vector<80x32xf32>
    %2 = arith.truncf %1 : vector<80x32xf32> to vector<80x32xbf16>
    %cst = arith.constant dense<0.000000e+00> : vector<80x32xf32>
    %3 = tpu.matmul %2, %0, %cst {dimension_numbers = #tpu.dot_dimension_numbers<[1], [0], [0], [1], [0, 0, 1, 1], [], []>} : vector<80x32xbf16>, vector<32x32xbf16>, vector<80x32xf32> -> vector<80x32xf32>
    %c0_3 = arith.constant 0 : index
    %c0_4 = arith.constant 0 : index
    %4 = vector.load %arg3[%c0_3, %c0_4] : memref<1x32xf32, #tpu.memory_space<vmem>>, vector<1x32xf32>
    %5 = vector.broadcast %4 : vector<1x32xf32> to vector<80x32xf32>
    %6 = arith.addf %3, %5 : vector<80x32xf32>
    %7 = arith.truncf %6 : vector<80x32xf32> to vector<80x32xbf16>
    %c0_5 = arith.constant 0 : index
    %c0_6 = arith.constant 0 : index
    %8 = vector.load %arg4[%c0_5, %c0_6] : memref<80x32xbf16, #tpu.memory_space<vmem>>, vector<80x32xbf16>
    tpu.vector_store %arg4[%c0_5, %c0_6], %7 {strides = array<i32>} : memref<80x32xbf16, #tpu.memory_space<vmem>>, vector<80x32xbf16>,
    return
  }
  func.func @transform_0(%arg0: i32) -> (i32, i32) {
    %c0_i32 = arith.constant 0 : i32
    %c0_i32_0 = arith.constant 0 : i32
    return %arg0, %c0_i32 : i32, i32
  }
  func.func @transform_1(%arg0: i32) -> (i32, i32) {
    %c0_i32 = arith.constant 0 : i32
    %c0_i32_0 = arith.constant 0 : i32
    %c0_i32_1 = arith.constant 0 : i32
    return %c0_i32, %c0_i32_0 : i32, i32
  }
  func.func @transform_2(%arg0: i32) -> (i32, i32) {
    %c0_i32 = arith.constant 0 : i32
    %c0_i32_0 = arith.constant 0 : i32
    %c0_i32_1 = arith.constant 0 : i32
    return %c0_i32, %c0_i32_0 : i32, i32
  }
  func.func @transform_3(%arg0: i32) -> (i32, i32) {
    %c0_i32 = arith.constant 0 : i32
    %c0_i32_0 = arith.constant 0 : i32
    return %arg0, %c0_i32 : i32, i32
  }
}

</mosaic_0001>

<bundles_post_ra>
// kernel: tpu_custom_call.1
= control target key start
LH: loop header
LB: loop body
LE: loop exit
PB: predicated region body
PF: predicated region fallthrough
CT: control target
= control target key end

     0   :  { %s523_s12 = smov 0   ;;  %s585_s0 = inlined_call_operand.vmem [shape: f32[160,32], index: 0, kind: input, shape index: {}]   ;;  %s586_s1 = inlined_call_operand.vmem [shape: bf16[32,32], index: 1, kind: input, shape index: {}]   ;;  %s587_s2 = inlined_call_operand.vmem [shape: f32[1,32], index: 2, kind: input, shape index: {}]   ;;  %s588_s3 = inlined_call_operand.vmem [shape: bf16[160,32], index: 3, kind: output, shape index: {}]  }
   0x1 LB: > { %s409_s13 = sadd.s32 4294967295, %s499_s12   ;;  %p413_p0 = scmp.ge.s32.totalorder %s499_s12, 1  ;;  %s499_s12 = sphi %s523_s12, %s13_s12  }
   0x2   : > { %p138_p1 = scmp.lt.s32.totalorder %s499_s12, 3 }
   0x4   : > { %p139_p2 = pnand %p413_p0, %p138_p1 }
   0x5   : > { %v491_v0 = vld [vmem:[%s586_s1] sm:$0xff] (!%p139_p2)   ;;  %v501_v1 = vmov (!%p139_p2), 0.0   ;;  %v492_v2 = vld [vmem:[%s586_s1 + $0x8] sm:$0xff] (!%p139_p2)   ;;  %s162_s18 = smul.u32 (!%p139_p2), 10, %s409_s13  ;;  %vm502_vm0 = vmmov (!%p139_p2), 0   ;;  %vm213_vm1 = vcmask (!%p139_p2), 261120  }
   0x6   : > { %142 = sbr.rel (%p139_p2) target bundleno = 254 (0xfe), region = 32  ;;  %453 = vmatprep.subr.bf16.mxu0 (!%p139_p2), %v501_v1  ;;  %477 = vmatprep.subr.bf16.mxu1 (!%p139_p2), %v501_v1  ;;  %v416_v18 = vld [vmem:[%s587_s2] ss:$0 sm:$0xff] (!%p139_p2)  ;;  %vm342_vm2 = vcmask (!%p139_p2), 257024  }
   0x7   : > { %454 = vmatpush3.bf16.msra.mxu0 (!%p139_p2), %v491_v0  ;;  %479 = vmatpush3.bf16.msra.mxu1 (!%p139_p2), %v491_v0  ;;  %p163_p3 = scmp.lt.s32.totalorder (!%p139_p2), %s162_s18, 19 }
   0x8   : > { %455 = vmatprep.subr.bf16.mxu0 (!%p139_p2), %v501_v1  ;;  %457 = vmatprep.mubr.msk.bf16.mxu0 (!%p139_p2), %vm502_vm0, %v501_v1 }
   0x9   : > { %478 = vmatprep.subr.bf16.mxu1 (!%p139_p2), %v501_v1  ;;  %469 = vmatprep.mubr.msk.bf16.mxu1 (!%p139_p2), %vm502_vm0, %v501_v1 }
   0xb   : > { %456 = vmatpush3.bf16.msra.mxu0 (!%p139_p2), %v492_v2  ;;  %480 = vmatpush3.bf16.msra.mxu1 (!%p139_p2), %v492_v2 }
   0xd   : > { %s590_s18 = smov (!%p163_p3, %s162_s18), 19 }
   0xe   : > { %s414_s19 = sshll.u32 %s590_s18, 3  ;;  %s415_s25 = sshll.u32 %s590_s18, 2 }
   0xf   : > { %s166_s22 = scalar_lea.vmem %s585_s0, %s414_s19  ;;  %s560_s28 = scalar_lea.vmem %s588_s3, %s415_s25 }
  0x10   : > { %v179_v3 = vld [vmem:[%s166_s22] sm:$0xff]  ;;  %v180_v4 = vld [vmem:[%s166_s22 + $0x8] sm:$0xff]  ;;  %v185_v5 = vld [vmem:[%s166_s22 + $0x30] sm:$0xff] }
  0x11   : > { %v189_v6 = vpack.c.bf16 %v180_v4, %v179_v3  ;;  %v186_v7 = vld [vmem:[%s166_s22 + $0x38] sm:$0xff]  ;;  %v181_v9 = vld [vmem:[%s166_s22 + $0x10] sm:$0xff]  ;;  %v187_v11 = vld [vmem:[%s166_s22 + $0x40] sm:$0xff] }
  0x12   : > { %v192_v8 = vpack.c.bf16 %v186_v7, %v185_v5  ;;  %v182_v10 = vld [vmem:[%s166_s22 + $0x18] sm:$0xff]  ;;  %v188_v12 = vld [vmem:[%s166_s22 + $0x48] sm:$0xff]  ;;  %v183_v15 = vld [vmem:[%s166_s22 + $0x20] sm:$0xff] }
  0x13   : > { %458 = vmatmul.mubr.msk.bf16.vlgmr.msra.gmra.mrb[0].mxu0 %vm213_vm1, %v189_v6  ;;  %v190_v13 = vpack.c.bf16 %v182_v10, %v181_v9  ;;  %v193_v14 = vpack.c.bf16 %v188_v12, %v187_v11  ;;  %v184_v16 = vld [vmem:[%s166_s22 + $0x28] sm:$0xff] }
  0x14   : > { %470 = vmatmul.mubr.msk.bf16.vlgmr.msra.gmra.mrb[0].mxu1 %vm213_vm1, %v192_v8  ;;  %461 = vmatprep.mubr.msk.bf16.mxu0 %vm502_vm0, %v501_v1  ;;  %v191_v17 = vpack.c.bf16 %v184_v16, %v183_v15 }
  0x15   : > { %473 = vmatprep.mubr.msk.bf16.mxu1 %vm502_vm0, %v501_v1 }
  0x1b   : > { %462 = vmatmul.mubr.msk.bf16.gmra.mrb[4].mxu0 %vm213_vm1, %v190_v13 }
  0x1c   : > { %474 = vmatmul.mubr.msk.bf16.gmra.mrb[4].mxu1 %vm213_vm1, %v193_v14  ;;  %465 = vmatprep.mubr.msk.bf16.mxu0 %vm502_vm0, %v501_v1 }
  0x23   : > { %466 = vmatmul.mubr.msk.bf16.gmra.mrb[8].mxu0 %vm213_vm1, %v191_v17 }
  0xe6   : > { %v263_v19 = vpop.f32.mrb[0].mxu0 }
  0xe7   : > { %v264_v20 = vadd.f32 %v416_v18, %v263_v19  ;;  %v459_v21 = vpop.f32.mrb[1].mxu0  ;;  %v287_v22 = vpop.f32.mrb[0].mxu1 }
  0xe8   : > { %v266_v23 = vpop.f32.mrb[2].mxu0  ;;  %v288_v24 = vadd.f32 %v416_v18, %v287_v22  ;;  %v471_v25 = vpop.f32.mrb[1].mxu1 }
  0xe9   : > { %v436_v26 = vpack.c.bf16 %v264_v20, %v264_v20  ;;  %v267_v27 = vadd.f32 %v416_v18, %v266_v23  ;;  %v460_v28 = vpop.f32.mrb[3].mxu0  ;;  %v290_v29 = vpop.f32.mrb[2].mxu1 }
  0xea   : > { %v442_v30 = vpack.c.bf16 %v288_v24, %v288_v24  ;;  %v291_v31 = vadd.f32 %v416_v18, %v290_v29  ;;  %v472_v32 = vpop.f32.mrb[3].mxu1 }
  0xeb   : > { %343 = vst.msk [vmem:[%s560_s28] sm:$0xf] %vm342_vm2, %v436_v26  ;;  %v437_v33 = vpack.c.bf16 %v267_v27, %v267_v27 }
  0xec   : > { %349 = vst.msk [vmem:[%s560_s28 + $0x18] sm:$0xf] %vm342_vm2, %v442_v30  ;;  %v443_v34 = vpack.c.bf16 %v291_v31, %v291_v31 }
  0xed   : > { %344 = vst.msk [vmem:[%s560_s28 + $0x4] sm:$0xf] %vm342_vm2, %v437_v33 }
  0xee   : > { %350 = vst.msk [vmem:[%s560_s28 + $0x1c] sm:$0xf] %vm342_vm2, %v443_v34  ;;  %v271_v35 = vpop.f32.mrb[4].mxu0 }
  0xef   : > { %v272_v36 = vadd.f32 %v416_v18, %v271_v35  ;;  %v463_v37 = vpop.f32.mrb[5].mxu0  ;;  %v295_v38 = vpop.f32.mrb[4].mxu1 }
  0xf0   : > { %v274_v39 = vpop.f32.mrb[6].mxu0  ;;  %v296_v40 = vadd.f32 %v416_v18, %v295_v38  ;;  %v475_v41 = vpop.f32.mrb[5].mxu1 }
  0xf1   : > { %v438_v42 = vpack.c.bf16 %v272_v36, %v272_v36  ;;  %v275_v43 = vadd.f32 %v416_v18, %v274_v39  ;;  %v464_v44 = vpop.f32.mrb[7].mxu0  ;;  %v298_v45 = vpop.f32.mrb[6].mxu1 }
  0xf2   : > { %v444_v46 = vpack.c.bf16 %v296_v40, %v296_v40  ;;  %v299_v47 = vadd.f32 %v416_v18, %v298_v45  ;;  %v476_v48 = vpop.f32.mrb[7].mxu1 }
  0xf3   : > { %345 = vst.msk [vmem:[%s560_s28 + $0x8] sm:$0xf] %vm342_vm2, %v438_v42  ;;  %v439_v49 = vpack.c.bf16 %v275_v43, %v275_v43 }
  0xf4   : > { %351 = vst.msk [vmem:[%s560_s28 + $0x20] sm:$0xf] %vm342_vm2, %v444_v46  ;;  %v445_v50 = vpack.c.bf16 %v299_v47, %v299_v47 }
  0xf5   : > { %346 = vst.msk [vmem:[%s560_s28 + $0xc] sm:$0xf] %vm342_vm2, %v439_v49 }
  0xf6   : > { %352 = vst.msk [vmem:[%s560_s28 + $0x24] sm:$0xf] %vm342_vm2, %v445_v50  ;;  %v279_v51 = vpop.f32.mrb[8].mxu0 }
  0xf7   : > { %v280_v52 = vadd.f32 %v416_v18, %v279_v51  ;;  %v467_v53 = vpop.f32.mrb[9].mxu0 }
  0xf8   : > { %v282_v54 = vpop.f32.mrb[10].mxu0 }
  0xf9   : > { %v440_v55 = vpack.c.bf16 %v280_v52, %v280_v52  ;;  %v283_v56 = vadd.f32 %v416_v18, %v282_v54  ;;  %v468_v57 = vpop.f32.mrb[11].mxu0 }
  0xfb   : > { %347 = vst.msk [vmem:[%s560_s28 + $0x10] sm:$0xf] %vm342_vm2, %v440_v55  ;;  %v441_v58 = vpack.c.bf16 %v283_v56, %v283_v56 }
  0xfd   : > { %348 = vst.msk [vmem:[%s560_s28 + $0x14] sm:$0xf] %vm342_vm2, %v441_v58 }
  0xfe PF: > { %s13_s12 = sadd.s32 1, %s499_s12  }
  0xff   : > { %p10_p4 = scmp.ge.s32.totalorder %s13_s12, 4  }
 0x101   :  { %12 = sbr.rel (!%p10_p4) target bundleno = 1 (0x1), region = 62 }

</bundles_post_ra>
